<compile_context>
chip_gen: v7x
topology: tpu7x:2x2x1
jax: 0.10.0
libtpu: 0.0.40
codegen_flags: <defaults>
</compile_context>

<pallas_src>
import functools

import jax
import jax.numpy as jnp
from jax.experimental import pallas as pl
from jax.experimental.pallas import tpu as pltpu


# ---------------------------------------------------------------------------
# In-kernel helpers
# ---------------------------------------------------------------------------
def _mlp_gate(avg, mx, w1t, w2t):
    """Shared CBAM MLP for both pooled branches.

    avg, mx : (bb, C) f32.  w1t : (C, H).  w2t : (H, C).  Returns sigmoid gate (bb, C).
    """
    bb = avg.shape[0]
    pooled = jnp.concatenate([avg, mx], axis=0)                     # (2*bb, C)
    h = jnp.dot(pooled, w1t, preferred_element_type=jnp.float32)    # (2*bb, H)
    h = jnp.maximum(h, 0.0)                                          # ReLU
    H = w2t.shape[0]
    if H <= 8:
        # Tiny contraction dim: VPU broadcast-multiply-add instead of a K=H MXU
        # matmul (saves an MXU push/pop on the per-step critical path).
        y = h[:, 0:1] * w2t[0:1, :]
        for k in range(1, H):
            y = y + h[:, k:k + 1] * w2t[k:k + 1, :]
    else:
        y = jnp.dot(h, w2t, preferred_element_type=jnp.float32)     # (2*bb, C)
    return jax.nn.sigmoid(y[:bb] + y[bb:])                          # (bb, C)


# ---------------------------------------------------------------------------
# Fused single-pass kernel (whole (bb, C, Lp) block resident in VMEM)
# ---------------------------------------------------------------------------
def _fused_kernel(x_ref, w1t_ref, w2t_ref, o_ref, *, l_valid):
    x = x_ref[...].astype(jnp.float32)                 # (bb, C, Lp) — pooling read
    bb, _, lp = x.shape

    if lp != l_valid:                                  # L was padded to 128-multiple
        lane = jax.lax.broadcasted_iota(jnp.int32, (1, 1, lp), 2)
        valid = lane < l_valid
        x_sum = jnp.where(valid, x, 0.0)
        x_max = jnp.where(valid, x, -jnp.inf)
    else:
        x_sum, x_max = x, x

    avg = jnp.sum(x_sum, axis=-1) * (1.0 / l_valid)    # (bb, C)
    mx = jnp.max(x_max, axis=-1)                       # (bb, C)
    gate = _mlp_gate(avg, mx, w1t_ref[...], w2t_ref[...])

    # Fresh read: keeps the big block's live range short across the MLP.
    o_ref[...] = (gate[:, :, None] * x_ref[...].astype(jnp.float32)).astype(o_ref.dtype)


# ---------------------------------------------------------------------------
# L-tiled two-pass kernels (for C*L per batch element too large for one block)
# ---------------------------------------------------------------------------
def _pool_kernel(x_ref, w1t_ref, w2t_ref, gate_ref, sum_acc, max_acc, *, l_valid, tl):
    l = pl.program_id(1)

    @pl.when(l == 0)
    def _():
        sum_acc[...] = jnp.zeros_like(sum_acc)
        max_acc[...] = jnp.full_like(max_acc, -jnp.inf)

    x = x_ref[...].astype(jnp.float32)                 # (bb, C, tl)
    lane = jax.lax.broadcasted_iota(jnp.int32, (1, 1, tl), 2) + l * tl
    valid = lane < l_valid
    sum_acc[...] += jnp.sum(jnp.where(valid, x, 0.0), axis=-1)
    max_acc[...] = jnp.maximum(max_acc[...],
                               jnp.max(jnp.where(valid, x, -jnp.inf), axis=-1))

    @pl.when(l == pl.num_programs(1) - 1)
    def _():
        avg = sum_acc[...] * (1.0 / l_valid)
        gate = _mlp_gate(avg, max_acc[...], w1t_ref[...], w2t_ref[...])
        gate_ref[...] = gate[:, :, None].astype(gate_ref.dtype)


def _apply_gate_kernel(gate_ref, x_ref, o_ref):
    g = gate_ref[...].astype(jnp.float32)              # (bb, C, 1)
    o_ref[...] = (g * x_ref[...].astype(jnp.float32)).astype(o_ref.dtype)


# ---------------------------------------------------------------------------
# Wrapper: per-generation sizing + padding + dispatch
# ---------------------------------------------------------------------------
def _tpu_sizing():
    """Per-generation block/grid policy.

    Returns (want_multi_block, max_block_bytes, vmem_capacity_bytes)."""
    try:
        info = pltpu.get_tpu_info()
        vmem_cap = int(getattr(info, "vmem_capacity_bytes", 64 << 20))
    except Exception:
        # Query unavailable -> conservative defaults (safe on every generation).
        return True, 2 << 20, 64 << 20
    if vmem_cap <= (64 << 20):
        # v7x: 64 MiB VMEM per TC, two TCs -> keep >= 2 grid steps, modest blocks.
        return True, 2 << 20, vmem_cap
    # v5e / v6e: single TensorCore, 128 MiB VMEM -> maximize block size.
    return False, 6 << 20, vmem_cap


def channel_attention(x, w1, w2, *, force_l_tiled=False):
    """x: (B, C, L); w1: (H, C); w2: (C, H).  Returns gate(x) * x, shape (B, C, L)."""
    B, C, L = x.shape
    H = w1.shape[0]
    dtype = x.dtype
    itemsize = jnp.dtype(dtype).itemsize

    want_ge2, max_block_bytes, _vmem_cap = _tpu_sizing()

    # Pre-transpose 1x1-conv weights once (layout plumbing stays in the wrapper).
    w1t = jnp.asarray(w1, jnp.float32).T               # (C, H)
    w2t = jnp.asarray(w2, jnp.float32).T               # (H, C)
    wt_bytes = 2 * C * H * 4

    Lp = pl.cdiv(L, 128) * 128                         # lane-dense output stores
    per_batch_bytes = C * Lp * itemsize
    use_tiled = force_l_tiled or per_batch_bytes > max_block_bytes

    if not use_tiled:
        # ------------------ fused single-pass path ------------------
        bb = max(1, min(B, max_block_bytes // per_batch_bytes))
        if want_ge2 and B >= 2:
            bb = min(bb, pl.cdiv(B, 2))                # >= 2 grid steps (v7x megacore)
        Bp = pl.cdiv(B, bb) * bb
        xp = x
        if (Bp, Lp) != (B, L):
            xp = jnp.pad(x, ((0, Bp - B), (0, 0), (0, Lp - L)))

        block_bytes = bb * per_batch_bytes
        vmem_limit = int(4 * block_bytes + 4 * wt_bytes + (4 << 20))

        out = pl.pallas_call(
            functools.partial(_fused_kernel, l_valid=L),
            out_shape=jax.ShapeDtypeStruct((Bp, C, Lp), dtype),
            grid_spec=pl.GridSpec(
                grid=(Bp // bb,),
                in_specs=[
                    pl.BlockSpec((bb, C, Lp), lambda b: (b, 0, 0)),
                    pl.BlockSpec((C, H), lambda b: (0, 0)),
                    pl.BlockSpec((H, C), lambda b: (0, 0)),
                ],
                out_specs=pl.BlockSpec((bb, C, Lp), lambda b: (b, 0, 0)),
            ),
            compiler_params=pltpu.CompilerParams(
                dimension_semantics=("parallel",),
                vmem_limit_bytes=vmem_limit),
        )(xp, w1t, w2t)
        return out[:B, :, :L]

    # ------------------ L-tiled two-pass path ------------------
    bb = 1
    tl = max(128, (max_block_bytes // (C * itemsize)) // 128 * 128)
    tl = min(tl, Lp)
    Lp2 = pl.cdiv(Lp, tl) * tl
    nl = Lp2 // tl
    xp = x if Lp2 == L else jnp.pad(x, ((0, 0), (0, 0), (0, Lp2 - L)))
    block_bytes = bb * C * tl * itemsize

    # Pass 1: pooled sum/max accumulated across L tiles, MLP + sigmoid at the end.
    gate = pl.pallas_call(
        functools.partial(_pool_kernel, l_valid=L, tl=tl),
        out_shape=jax.ShapeDtypeStruct((B, C, 1), jnp.float32),
        grid_spec=pltpu.PrefetchScalarGridSpec(
            num_scalar_prefetch=0,
            grid=(B, nl),
            in_specs=[
                pl.BlockSpec((bb, C, tl), lambda b, l: (b, 0, l)),
                pl.BlockSpec((C, H), lambda b, l: (0, 0)),
                pl.BlockSpec((H, C), lambda b, l: (0, 0)),
            ],
            out_specs=pl.BlockSpec((bb, C, 1), lambda b, l: (b, 0, 0)),
            scratch_shapes=[pltpu.VMEM((bb, C), jnp.float32),
                            pltpu.VMEM((bb, C), jnp.float32)],
        ),
        compiler_params=pltpu.CompilerParams(
            dimension_semantics=("parallel", "arbitrary"),
            vmem_limit_bytes=int(2 * block_bytes + 4 * wt_bytes + (4 << 20))),
    )(xp, w1t, w2t)

    # Pass 2: re-stream x and apply the per-(batch, channel) gate.
    out = pl.pallas_call(
        _apply_gate_kernel,
        out_shape=jax.ShapeDtypeStruct((B, C, Lp2), dtype),
        grid_spec=pl.GridSpec(
            grid=(B, nl),
            in_specs=[
                pl.BlockSpec((bb, C, 1), lambda b, l: (b, 0, 0)),
                pl.BlockSpec((bb, C, tl), lambda b, l: (b, 0, l)),
            ],
            out_specs=pl.BlockSpec((bb, C, tl), lambda b, l: (b, 0, l)),
        ),
        compiler_params=pltpu.CompilerParams(
            dimension_semantics=("parallel", "parallel"),
            vmem_limit_bytes=int(4 * block_bytes + (4 << 20))),
    )(gate, xp)
    return out[:, :, :L]


# ---------------------------------------------------------------------------
# Pure-JAX reference (matches the PyTorch forward)
# ---------------------------------------------------------------------------
def channel_attention_ref(x, w1, w2):
    avg = jnp.mean(x, axis=-1, keepdims=True)          # (B, C, 1)
    mx = jnp.max(x, axis=-1, keepdims=True)            # (B, C, 1)

    def fc(p):
        h = jnp.einsum("hc,bcl->bhl", w1, p)
        h = jnp.maximum(h, 0.0)
        return jnp.einsum("ch,bhl->bcl", w2, h)

    gate = jax.nn.sigmoid(fc(avg) + fc(mx))            # (B, C, 1)
    return gate * x


if __name__ == "__main__":
    B, C, L = 2, 32, 128
    ratio = 16
    H = max(C // ratio, 1)                             # hidden channels = 2

    key = jax.random.PRNGKey(0)
    kx, k1, k2 = jax.random.split(key, 3)
    x = jax.random.normal(kx, (B, C, L), dtype=jnp.float32)
    # Conv1d weights (kernel_size=1, no bias), trailing kernel dim squeezed.
    w1 = jax.random.normal(k1, (H, C), dtype=jnp.float32) * 0.1
    w2 = jax.random.normal(k2, (C, H), dtype=jnp.float32) * 0.1

    ref = channel_attention_ref(x, w1, w2)

    # Fused single-pass path.
    out = jax.block_until_ready(channel_attention(x, w1, w2))
    assert out.shape == (B, C, L)
    assert jnp.allclose(out, ref, atol=1e-5, rtol=1e-5), "fused path mismatch vs reference"

    # Also exercise the L-tiled two-pass path (used when C*L per batch exceeds VMEM budget).
    out_t = jax.block_until_ready(channel_attention(x, w1, w2, force_l_tiled=True))
    assert jnp.allclose(out_t, ref, atol=1e-5, rtol=1e-5), "tiled path mismatch vs reference"

    print("KERNEL_OK")
</pallas_src>

<mosaic_0001>
module attributes {stable_mosaic.version = 11 : i64} {
  func.func @_fused_kernel(%arg0: i32, %arg1: memref<1x32x128xf32, #tpu.memory_space<vmem>>, %arg2: memref<32x2xf32, #tpu.memory_space<vmem>>, %arg3: memref<2x32xf32, #tpu.memory_space<vmem>>, %arg4: memref<1x32x128xf32, #tpu.memory_space<vmem>>) attributes {dimension_semantics = [#tpu.dimension_semantics<parallel>], iteration_bounds = array<i64: 2>, scalar_prefetch = 0 : i64, scratch_operands = 0 : i64, tpu.core_type = #tpu.core_type<tc>, window_params = [{transform_indices = @transform_0, window_bounds = array<i64: 1, 32, 128>}, {pipeline_mode = #tpu.pipeline_mode<synchronous>, transform_indices = @transform_1, window_bounds = array<i64: 32, 2>}, {pipeline_mode = #tpu.pipeline_mode<synchronous>, transform_indices = @transform_2, window_bounds = array<i64: 2, 32>}, {transform_indices = @transform_3, window_bounds = array<i64: 1, 32, 128>}]} {
    %c0 = arith.constant 0 : index
    %c0_0 = arith.constant 0 : index
    %c0_1 = arith.constant 0 : index
    %0 = vector.load %arg1[%c0, %c0_0, %c0_1] : memref<1x32x128xf32, #tpu.memory_space<vmem>>, vector<1x32x128xf32>
    %cst = arith.constant dense<0.000000e+00> : vector<1x32xf32>
    %1 = vector.multi_reduction <add>, %0, %cst [2] : vector<1x32x128xf32> to vector<1x32xf32>
    %cst_2 = arith.constant 7.812500e-03 : f32
    %2 = vector.broadcast %cst_2 : f32 to vector<1x32xf32>
    %3 = arith.mulf %1, %2 : vector<1x32xf32>
    %cst_3 = arith.constant dense<0xFF800000> : vector<1x32xf32>
    %4 = vector.multi_reduction <maximumf>, %0, %cst_3 [2] : vector<1x32x128xf32> to vector<1x32xf32>
    %c0_4 = arith.constant 0 : index
    %c0_5 = arith.constant 0 : index
    %5 = vector.load %arg2[%c0_4, %c0_5] : memref<32x2xf32, #tpu.memory_space<vmem>>, vector<32x2xf32>
    %c0_6 = arith.constant 0 : index
    %c0_7 = arith.constant 0 : index
    %6 = vector.load %arg3[%c0_6, %c0_7] : memref<2x32xf32, #tpu.memory_space<vmem>>, vector<2x32xf32>
    %7 = tpu.concatenate %3, %4 in 0 : vector<1x32xf32>, vector<1x32xf32> -> vector<2x32xf32>
    %cst_8 = arith.constant dense<0.000000e+00> : vector<2x2xf32>
    %8 = tpu.matmul %7, %5, %cst_8 {dimension_numbers = #tpu.dot_dimension_numbers<[1], [0], [0], [1], [0, 0, 1, 1], [], []>} : vector<2x32xf32>, vector<32x2xf32>, vector<2x2xf32> -> vector<2x2xf32>
    %cst_9 = arith.constant 0.000000e+00 : f32
    %9 = vector.broadcast %cst_9 : f32 to vector<2x2xf32>
    %10 = arith.maximumf %8, %9 : vector<2x2xf32>
    %11 = vector.extract_strided_slice %10 {offsets = [0, 0], sizes = [2, 1], strides = [1, 1]} : vector<2x2xf32> to vector<2x1xf32>
    %12 = vector.extract_strided_slice %6 {offsets = [0, 0], sizes = [1, 32], strides = [1, 1]} : vector<2x32xf32> to vector<1x32xf32>
    %13 = vector.broadcast %11 : vector<2x1xf32> to vector<2x32xf32>
    %14 = vector.broadcast %12 : vector<1x32xf32> to vector<2x32xf32>
    %15 = arith.mulf %13, %14 : vector<2x32xf32>
    %16 = vector.extract_strided_slice %10 {offsets = [0, 1], sizes = [2, 1], strides = [1, 1]} : vector<2x2xf32> to vector<2x1xf32>
    %17 = vector.extract_strided_slice %6 {offsets = [1, 0], sizes = [1, 32], strides = [1, 1]} : vector<2x32xf32> to vector<1x32xf32>
    %18 = vector.broadcast %16 : vector<2x1xf32> to vector<2x32xf32>
    %19 = vector.broadcast %17 : vector<1x32xf32> to vector<2x32xf32>
    %20 = arith.mulf %18, %19 : vector<2x32xf32>
    %21 = arith.addf %15, %20 : vector<2x32xf32>
    %22 = vector.extract_strided_slice %21 {offsets = [0, 0], sizes = [1, 32], strides = [1, 1]} : vector<2x32xf32> to vector<1x32xf32>
    %23 = vector.extract_strided_slice %21 {offsets = [1, 0], sizes = [1, 32], strides = [1, 1]} : vector<2x32xf32> to vector<1x32xf32>
    %24 = arith.addf %22, %23 : vector<1x32xf32>
    %25 = arith.negf %24 : vector<1x32xf32>
    %26 = math.exp %25 : vector<1x32xf32>
    %cst_10 = arith.constant 1.000000e+00 : f32
    %27 = vector.broadcast %cst_10 : f32 to vector<1x32xf32>
    %28 = arith.addf %27, %26 : vector<1x32xf32>
    %29 = arith.divf %27, %28 : vector<1x32xf32>
    %30 = vector.shape_cast %29 : vector<1x32xf32> to vector<1x32x1xf32>
    %c0_11 = arith.constant 0 : index
    %c0_12 = arith.constant 0 : index
    %c0_13 = arith.constant 0 : index
    %31 = vector.load %arg1[%c0_11, %c0_12, %c0_13] : memref<1x32x128xf32, #tpu.memory_space<vmem>>, vector<1x32x128xf32>
    %32 = vector.broadcast %30 : vector<1x32x1xf32> to vector<1x32x128xf32>
    %33 = arith.mulf %32, %31 : vector<1x32x128xf32>
    %c0_14 = arith.constant 0 : index
    %c0_15 = arith.constant 0 : index
    %c0_16 = arith.constant 0 : index
    %34 = vector.load %arg4[%c0_14, %c0_15, %c0_16] : memref<1x32x128xf32, #tpu.memory_space<vmem>>, vector<1x32x128xf32>
    tpu.vector_store %arg4[%c0_14, %c0_15, %c0_16], %33 {strides = array<i32>} : memref<1x32x128xf32, #tpu.memory_space<vmem>>, vector<1x32x128xf32>,
    return
  }
  func.func @transform_0(%arg0: i32) -> (i32, i32, i32) {
    %c0_i32 = arith.constant 0 : i32
    %c0_i32_0 = arith.constant 0 : i32
    %c0_i32_1 = arith.constant 0 : i32
    return %arg0, %c0_i32, %c0_i32_0 : i32, i32, i32
  }
  func.func @transform_1(%arg0: i32) -> (i32, i32) {
    %c0_i32 = arith.constant 0 : i32
    %c0_i32_0 = arith.constant 0 : i32
    %c0_i32_1 = arith.constant 0 : i32
    return %c0_i32, %c0_i32_0 : i32, i32
  }
  func.func @transform_2(%arg0: i32) -> (i32, i32) {
    %c0_i32 = arith.constant 0 : i32
    %c0_i32_0 = arith.constant 0 : i32
    %c0_i32_1 = arith.constant 0 : i32
    return %c0_i32, %c0_i32_0 : i32, i32
  }
  func.func @transform_3(%arg0: i32) -> (i32, i32, i32) {
    %c0_i32 = arith.constant 0 : i32
    %c0_i32_0 = arith.constant 0 : i32
    %c0_i32_1 = arith.constant 0 : i32
    return %arg0, %c0_i32, %c0_i32_0 : i32, i32, i32
  }
}

</mosaic_0001>

<bundles_post_ra>
// kernel: tpu_custom_call.1
= control target key start
LH: loop header
LB: loop body
LE: loop exit
PB: predicated region body
PF: predicated region fallthrough
CT: control target
= control target key end

     0   :  { %8 = vsyncpa [#allocation3], 0  ;;  %s937_s0 = inlined_call_operand.hbm [shape: f32[2,32,128], index: 0, kind: input, shape index: {}]   ;;  %s938_s1 = inlined_call_operand.vmem [shape: f32[32,2], index: 1, kind: input, shape index: {}]   ;;  %s939_s2 = inlined_call_operand.vmem [shape: f32[2,32], index: 2, kind: input, shape index: {}]   ;;  %s940_s3 = inlined_call_operand.hbm [shape: f32[2,32,128], index: 3, kind: output, shape index: {}]  }
   0x1   :  { %10 = vsyncpa [#allocation3 + $0x1], 0 }
   0x2   :  { %11 = vsyncpa [#allocation4], 0 }
   0x3   :  { %13 = vsyncpa [#allocation4 + $0x1], 0  ;;  %s726_s12 = smov 0   ;;  %s728_s13 = smov 0  }
   0x4   :  { %s730_s14 = smov 0   ;;  %s732_s15 = smov 0  }
   0x5 LB: > { %s747_s16 = sadd.s32 4294967295, %s693_s15   ;;  %s495_s17 = sadd.s32 4294967294, %s693_s15   ;;  %s693_s15 = sphi %s732_s15, %s953_s15   ;;  %s689_s14 = sphi %s730_s14, %s952_s14   ;;  %s685_s13 = sphi %s728_s13, %s951_s13   ;;  %s681_s12 = sphi %s726_s12, %s950_s12  }
   0x6   : > { %s751_s18 = sadd.s32 1, %s693_s15   ;;  %s26_s19 = sadd.s32 1, %s689_s14 }
   0x7   : > { %s23_s20 = ssub.s32 %s693_s15, %s751_s18  ;;  %p33_p0 = scmp.ne.s32.totalorder %s689_s14, %s685_s13 }
   0x8   : > { %p24_p1 = scmp.eq.s32.totalorder %s23_s20, 0  ;;  %p34_p2 = scmp.eq.s32.totalorder %s693_s15, 0 }
   0x9   : > { %p39_p3 = scmp.ne.s32.totalorder %s685_s13, %s681_s12  ;;  %p40_p4 = scmp.eq.s32.totalorder %s747_s16, 0 }
   0xa   : > { %s763_s21 = scalar_select %p24_p1, %s689_s14, %s26_s19  }
   0xb   : > { %p765_p5 = por %p34_p2, %p33_p0  ;;  %p769_p6 = por %p40_p4, %p39_p3 }
   0xc   : > { %p105_p7 = scmp.eq.s32.totalorder %s747_s16, 1  ;;  %p111_p8 = scmp.eq.s32.totalorder %s495_s17, 1 }
   0xd   : > { %p547_p10 = scmp.lt.s32.totalorder %s693_s15, 2  ;;  %s137_s26 = sand.u32 1, %s689_s14  }
   0xe   : > { %p776_p11 = por %p105_p7, %p33_p0  ;;  %p780_p12 = por %p111_p8, %p39_p3 }
   0xf   : > { %s511_s27 = sshll.u32 %s693_s15, 9  ;;  %s498_s28 = sshll.u32 %s137_s26, 5 }
  0x10   : > { %s944_s24 = scalar_select %p776_p11, 1, 0 }
  0x11   : > { %s945_s25 = scalar_select %p780_p12, 1, 0 }
  0x12   : > { %s789_s4 = scalar_lea.hbm %s937_s0, %s511_s27  ;;  %s141_s5 = scalar_lea.vmem [#allocation2], %s498_s28 }
  0x13   : > { %s148_s6 = sshll.u32 %s141_s5, 4  ;;  %p793_p13 = pnand %p547_p10, %p765_p5  ;;  %s797_s6 = int_to_ptr.vmem [resolvable:$true] %s148_s6 }
  0x14   : > { %s799_s8 = scalar_lea.sflag [#allocation3], %s137_s26  ;;  %s597_s9 = scalar_lea.hbm %s789_s4, 512 }
  0x15   : > { %p598_p0 = scmp.ne.s32.totalorder %s789_s4, %s597_s9  ;;  %p599_p1 = pneg %p793_p13 }
  0x16   : > { %s602_s17 = scalar_lea.hbm %s937_s0, 1024  ;;  %p603_p4 = scmp.lt.u32.totalorder %s789_s4, %s937_s0 }
  0x17   : > { %p600_p2 = pnand %p599_p1, %p598_p0  ;;  %p604_p5 = scmp.lt.u32.totalorder %s602_s17, %s597_s9 }
  0x18   : > { %p606_p8 = scmp.lt.u32.totalorder %s597_s9, %s789_s4 }
  0x19   : > { %p601_p3 = pneg %p600_p2  ;;  %p605_p7 = por %p604_p5, %p603_p4 }
  0x1b   : > { %p607_p10 = por %p606_p8, %p605_p7 }
  0x1d   : > { %p608_p9 = pnand %p607_p10, %p601_p3 }
  0x1f   : > { %611 = shalt.err (!%p608_p9)
}
  0x20   : > { %s612_s22 = scalar_lea.vmem %s797_s6, 512  ;;  %s695_s26 = smov [#allocation2]  }
  0x21   : > { %p613_p0 = scmp.ne.s32.totalorder %s797_s6, %s612_s22  ;;  %s617_s27 = sshll.u32 %s695_s26, 4  ;;  %s618_s27 = int_to_ptr.vmem [resolvable:$false] %s617_s27 }
  0x22   : > { %s619_s28 = scalar_lea.vmem %s618_s27, 1024  ;;  %p620_p11 = scmp.lt.s32.totalorder %s797_s6, %s618_s27 }
  0x23   : > { %p615_p2 = pnand %p613_p0, %p599_p1  ;;  %p621_p4 = scmp.lt.s32.totalorder %s619_s28, %s612_s22 }
  0x25   : > { %p616_p12 = pneg %p615_p2  ;;  %p622_p5 = por %p621_p4, %p620_p11 }
  0x27   : > { %p623_p7 = pnand %p622_p5, %p616_p12 }
  0x29   : > { %626 = shalt.err (!%p623_p7)
}
  0x2a   : > { %s696_s29 = smov 128   ;;  %s697_s30 = smov 8  }
  0x2b   : > { %542 = dma.hbm_to_vmem [thread:$0]  (!%p793_p13), %s789_s4, 512, %s797_s6, %s799_s8, %s696_s29, %s696_s29, %s697_s30  }
  0x2c   : > { %p501_p9 = scmp.ge.s32.totalorder %s693_s15, 1  ;;  %p156_p1 = scmp.lt.s32.totalorder %s693_s15, 3 }
  0x2e   : > { %p157_p3 = pnand %p501_p9, %p156_p1 }
  0x2f   : > { %s830_s5 = sand.u32 (!%p157_p3), 1, %s685_s13  }
  0x30   : > { %160 = sbr.rel (%p157_p3) target bundleno = 738 (0x2e2), region = 32  ;;  %s502_s9 = sshll.u32 (!%p157_p3), %s830_s5, 5 }
  0x31   : > { %s163_s10 = scalar_lea.sflag (!%p157_p3), [#allocation3], %s830_s5  ;;  %s166_s11 = scalar_lea.vmem (!%p157_p3), [#allocation2], %s502_s9 }
  0x37   : > { %672 = dma.done.wait (%p769_p6), %s163_s10, 512  }
  0x38   : > { %674 = vsyncadd (%p769_p6), %s163_s10, 4294966784  ;;  %v840_v0 = vld [vmem:[%s166_s11 + $0x10] sm:$0xff]  ;;  %v842_v1 = vld [vmem:[%s166_s11] sm:$0xff]  ;;  %v698_v7 = vmov 0.0|0.0   ;;  %vm699_vm0 = vmmov 0   ;;  %v700_v11 = vmov 0.0   ;;  %v222_v12 = vlaneseq }
  0x39   : > { %197 = vadd.xlane.f32.xlu1 %v840_v0  ;;  %193 = vadd.xlane.f32.xlu0 %v842_v1  ;;  %v846_v2 = vld [vmem:[%s166_s11 + $0x18] sm:$0xff]  ;;  %v848_v3 = vld [vmem:[%s166_s11 + $0x8] sm:$0xff]  ;;  %v213_v4 = vld [vmem:[%s938_s1] sm:$0xff]  ;;  %vm233_vm1 = vcmask 130112   ;;  %vm240_vm2 = vcmask 195712   ;;  %vm247_vm3 = vcmask 261312  }
  0x3a   : > { %v214_v5 = vld [vmem:[%s938_s1 + $0x8] sm:$0xff]  ;;  %529 = vmatprep.subr.bf16.mxu0 %v698_v7  ;;  %v215_v8 = vld [vmem:[%s938_s1 + $0x10] sm:$0xff]  ;;  %v216_v9 = vld [vmem:[%s938_s1 + $0x18] sm:$0xff]  ;;  %526 = vmatprep.mubr.msk.f32.mxu0 %vm699_vm0, %v700_v11  ;;  %v223_v13 = vand.u32 127, %v222_v12  ;;  %v868_v15 = vshrl.u32 %v222_v12, 7  ;;  %vm274_vm4 = vcmask 1040384  }
  0x3b   : > { %v530_v6 = vpack.c.bf16 %v214_v5, %v213_v4  ;;  %v533_v10 = vpack.c.bf16 %v216_v9, %v215_v8  ;;  %vm276_vm5 = vcmask 261120   ;;  %v701_v49 = vmov 1   ;;  %v217_v56 = vld [vmem:[%s939_s2] sm:$0x3]  ;;  %s188_s27 = scalar_lea.vmem [#allocation5], %s502_s9  ;;  %s512_s29 = sshll.u32 %s747_s16, 9 }
  0x3c   : > { %v228_v14 = vadd.s32 4294967288, %v223_v13  ;;  %v235_v18 = vadd.s32 4294967280, %v223_v13  ;;  %v226_v20 = vsub.s32 %v223_v13, %v868_v15  ;;  %v242_v22 = vadd.s32 4294967272, %v223_v13  ;;  %591 = vset.pattern.permute.xlu1 %v701_v49  ;;  %s422_s28 = sshll.u32 %s188_s27, 4  ;;  %s892_s10 = scalar_lea.hbm %s940_s3, %s512_s29  ;;  %s887_s28 = int_to_ptr.vmem [resolvable:$true] %s422_s28 }
  0x3d   : > { %199 = vadd.xlane.f32.xlu1 %v846_v2  ;;  %195 = vadd.xlane.f32.xlu0 %v848_v3  ;;  %v702_v50 = vmov 0   ;;  %v367_v54 = vsub.s32 1, %v868_v15  ;;  %v358_v55 = vsub.s32 0, %v868_v15  ;;  %s409_s11 = scalar_lea.sflag [#allocation4], %s830_s5  ;;  %s627_s23 = scalar_lea.vmem %s887_s28, 512 }
  0x3e   : > { %531 = vmatpush3.bf16.msra.mxu0 %v530_v6  ;;  %v231_v19 = vsub.s32 %v228_v14, %v868_v15  ;;  %v238_v26 = vsub.s32 %v235_v18, %v868_v15  ;;  %v245_v30 = vsub.s32 %v242_v22, %v868_v15  ;;  %590 = vset.pattern.permute.xlu0 %v702_v50  ;;  %p628_p6 = scmp.ne.s32.totalorder %s887_s28, %s627_s23  ;;  %p947_p11 = scmp.ne.s32.totalorder %s944_s24, 0 }
  0x3f   : > { %532 = vmatprep.subr.bf16.mxu0 %v698_v7  ;;  %v368_v57 = vrot.slane %v217_v56, %v367_v54  ;;  %v359_v58 = vrot.slane %v217_v56, %v358_v55  ;;  %s703_s16 = smov [#allocation5]  }
  0x40   : > { %p629_p12 = pnand %p628_p6, %p947_p11  ;;  %s631_s4 = sshll.u32 %s703_s16, 4  ;;  %s632_s4 = int_to_ptr.vmem [resolvable:$false] %s631_s4 }
  0x41   : > { %207 = vmax.xlane.f32.xlu1 %v848_v3  ;;  %205 = vmax.xlane.f32.xlu0 %v842_v1  ;;  %s633_s6 = scalar_lea.vmem %s632_s4, 1024  ;;  %p634_p8 = scmp.lt.s32.totalorder %s887_s28, %s632_s4 }
  0x42   : > { %534 = vmatpush3.bf16.msra.mxu0 %v533_v10  ;;  %p630_p13 = pneg %p629_p12  ;;  %p635_p10 = scmp.lt.s32.totalorder %s633_s6, %s627_s23 }
  0x44   : > { %p636_p0 = por %p635_p10, %p634_p8 }
  0x45   : > { %209 = vmax.xlane.f32.xlu0 %v840_v0  ;;  %211 = vmax.xlane.f32.xlu1 %v846_v2 }
  0x46   : > { %p637_p2 = pnand %p636_p0, %p630_p13 }
  0xc6   : > { %v198_v16 = vpop.xlane.xlu1 %197  ;;  %v194_v17 = vpop.xlane.xlu0 %193 }
  0xc7   : > { %v201_v21 = vmul.f32 0.0078125, %v194_v17  ;;  %v203_v27 = vmul.f32 0.0078125, %v198_v16 }
  0xc9   : > { %v227_v29 = vrot.slane %v201_v21, %v226_v20  ;;  %v239_v37 = vrot.slane %v203_v27, %v238_v26 }
  0xca   : > { %v200_v23 = vpop.xlane.xlu1 %199  ;;  %v196_v24 = vpop.xlane.xlu0 %195 }
  0xcb   : > { %v202_v25 = vmul.f32 0.0078125, %v196_v24  ;;  %v204_v31 = vmul.f32 0.0078125, %v200_v23 }
  0xcd   : > { %v232_v28 = vrot.slane %v202_v25, %v231_v19  ;;  %v246_v38 = vrot.slane %v204_v31, %v245_v30 }
  0xce   : > { %v208_v32 = vpop.xlane.xlu1 %207  ;;  %v206_v33 = vpop.xlane.xlu0 %205 }
  0xcf   : > { %v234_v34 = vsel %vm233_vm1, %v232_v28, %v227_v29  ;;  %v261_v35 = vrot.slane %v208_v32, %v231_v19  ;;  %v257_v36 = vrot.slane %v206_v33, %v226_v20 }
  0xd0   : > { %v241_v43 = vsel %vm240_vm2, %v239_v37, %v234_v34 }
  0xd1   : > { %v262_v44 = vsel %vm233_vm1, %v261_v35, %v257_v36  ;;  %v248_v47 = vsel %vm247_vm3, %v246_v38, %v241_v43 }
  0xd2   : > { %v210_v39 = vpop.xlane.xlu0 %209  ;;  %v212_v40 = vpop.xlane.xlu1 %211 }
  0xd3   : > { %v266_v41 = vrot.slane %v210_v39, %v238_v26  ;;  %v271_v42 = vrot.slane %v212_v40, %v245_v30 }
  0xd5   : > { %v267_v45 = vsel %vm240_vm2, %v266_v41, %v262_v44 }
  0xd6   : > { %v272_v46 = vsel %vm247_vm3, %v271_v42, %v267_v45 }
  0xd7   : > { %v275_v48 = vsel %vm274_vm4, %v248_v47, %v272_v46 }
  0xd8   : > { %527 = vmatmul.mubr.msk.f32.vlgmr.msra.gmra.mrb[0].mxu0 %vm276_vm5, %v275_v48 }
 0x1ab   : > { %v346_v51 = vpop.f32.mrb[0].mxu0 }
 0x1ac   : > { %v350_v52 = vmax.f32 %v346_v51, 0.0  ;;  %v528_v53 = vpop.f32.mrb[1].mxu0 }
 0x1ae   : > { %362 = vperm.xlu1 %591, %v350_v52   ;;  %353 = vperm.xlu0 %590, %v350_v52  }
 0x1b2   : > { %592 = vset.pattern.permute.xlu0 %v701_v49 }
 0x22d   : > { %v363_v59 = vpop.permute.xlu1 %362  ;;  %v354_v60 = vpop.permute.xlu0 %353 }
 0x22e   : > { %v369_v61 = vmul.f32 %v368_v57, %v363_v59  ;;  %v360_v62 = vmul.f32 %v359_v58, %v354_v60 }
 0x230   : > { %v370_v63 = vadd.f32 %v369_v61, %v360_v62 }
 0x232   : > { %v372_v4 = vrot.slane %v370_v63, 1 }
 0x234   : > { %v374_v5 = vadd.f32 %v372_v4, %v370_v63 }
 0x236   : > { %v505_v6 = vmul.f32 -1.442695, %v374_v5 }
 0x238   : > { %593 = vpow2.f32 %v505_v6 }
 0x242   : > { %v594_v7 = vpop.eup %593 }
 0x243   : > { %v378_v8 = vadd.f32 1.0, %v594_v7 }
 0x245   : > { %595 = vrcp.f32 %v378_v8 }
 0x24f   : > { %v596_v9 = vpop.eup %595 }
 0x250   : > { %v384_v10 = vrot.slane %v596_v9, %v358_v55 }
 0x252   : > { %386 = vbcast.lane.b32.xlu1 %v384_v10, 256 }
 0x256   : > { %390 = vbcast.lane.b32.xlu1 %v384_v10, 264 }
 0x25a   : > { %394 = vbcast.lane.b32.xlu1 %v384_v10, 272 }
 0x25e   : > { %398 = vbcast.lane.b32.xlu1 %v384_v10, 280 }
 0x2c4   : > { %v387_v11 = vpop.permute.xlu1 %386 }
 0x2c5   : > { %v400_v12 = vmul.f32 %v387_v11, %v842_v1 }
 0x2c7   : > { %404 = vst [vmem:[%s188_s27] sm:$0xff] %v400_v12 }
 0x2c8   : > { %v391_v13 = vpop.permute.xlu1 %390 }
 0x2c9   : > { %v401_v14 = vmul.f32 %v391_v13, %v848_v3 }
 0x2cb   : > { %405 = vst [vmem:[%s188_s27 + $0x8] sm:$0xff] %v401_v14 }
 0x2cc   : > { %v395_v15 = vpop.permute.xlu1 %394 }
 0x2cd   : > { %v402_v16 = vmul.f32 %v395_v15, %v840_v0 }
 0x2cf   : > { %406 = vst [vmem:[%s188_s27 + $0x10] sm:$0xff] %v402_v16 }
 0x2d0   : > { %v399_v1 = vpop.permute.xlu1 %398 }
 0x2d1   : > { %v403_v3 = vmul.f32 %v399_v1, %v846_v2 }
 0x2d3   : > { %407 = vst [vmem:[%s188_s27 + $0x18] sm:$0xff] %v403_v3 }
 0x2d4   : > { %640 = shalt.err (!%p637_p2)
}
 0x2d5   : > { %s641_s7 = scalar_lea.hbm %s892_s10, 512  ;;  %s645_s19 = scalar_lea.hbm %s940_s3, 1024 }
 0x2d6   : > { %p642_p4 = scmp.ne.s32.totalorder %s892_s10, %s641_s7  ;;  %p646_p9 = scmp.lt.u32.totalorder %s892_s10, %s940_s3 }
 0x2d7   : > { %p647_p1 = scmp.lt.u32.totalorder %s645_s19, %s641_s7  ;;  %p649_p6 = scmp.lt.u32.totalorder %s641_s7, %s892_s10 }
 0x2d8   : > { %p643_p5 = pnand %p642_p4, %p947_p11 }
 0x2d9   : > { %p648_p3 = por %p647_p1, %p646_p9 }
 0x2da   : > { %p644_p7 = pneg %p643_p5 }
 0x2db   : > { %p650_p12 = por %p649_p6, %p648_p3 }
 0x2dd   : > { %p651_p13 = pnand %p650_p12, %p644_p7 }
 0x2df   : > { %654 = shalt.err (!%p651_p13)
}
 0x2e0   : > { %s704_s26 = smov 128   ;;  %s705_s27 = smov 8  }
 0x2e1   : > { %537 = dma.vmem_to_hbm [thread:$0]  (%p947_p11), %s887_s28, 512, %s892_s10, %s409_s11, %s704_s26, %s704_s26, %s705_s27  }
 0x2e2 PF: > { %s437_s29 = sand.u32 1, %s681_s12   ;;  %p948_p8 = scmp.ne.s32.totalorder %s945_s25, 0 }
 0x2e3   : > { %p949_p10 = scmp.ge.s32.totalorder %s693_s15, 2  ;;  %s438_s30 = scalar_lea.sflag [#allocation4], %s437_s29 }
 0x2e5   : > { %p544_p0 = pnand %p949_p10, %p948_p8 }
 0x2e7   : > { %676 = dma.done.wait (!%p544_p0), %s438_s30, 512  }
 0x2e8   : > { %678 = vsyncadd (!%p544_p0), %s438_s30, 4294966784  ;;  %p16_p2 = scmp.ge.s32.totalorder %s751_s18, 4   ;;  %s950_s12 = smov %s685_s13 }
 0x2e9   : > { %s951_s13 = smov %s689_s14  ;;  %s952_s14 = smov %s763_s21 }
 0x2ea   : > { %s953_s15 = smov %s751_s18  ;;  %18 = sbr.rel (!%p16_p2) target bundleno = 5 (0x5), region = 77 }
 0x2f1   :  { %443 = vsyncpa [#allocation3], 1 }
 0x2f2   :  { %445 = vsyncpa [#allocation3 + $0x1], 1 }
 0x2f3   :  { %446 = vsyncpa [#allocation4], 1 }
 0x2f4   :  { %448 = vsyncpa [#allocation4 + $0x1], 1 }

</bundles_post_ra>
